<compile_context>
chip_gen: v6e
topology: v6e:2x2x1
jax: 0.10.0
libtpu: 0.0.40
codegen_flags: <defaults>
</compile_context>

<pallas_src>
import functools

import jax
import jax.numpy as jnp
from jax import lax
from jax.experimental import pallas as pl
from jax.experimental.pallas import tpu as pltpu


# ------------------------------------------------------------------ config --
CONF = {
    "preproc": {"ensemble": 4, "ensemble_unif": False, "resize": 16},
    "noise": {
        "D": 1.0, "t": 0.05, "snr": 20.0, "dT": 0.0, "dO": 0.1,
        "rn": 1.0, "fw": 16.0, "bit": 8, "discretize": "on",
        "rotation_sym": 0, "apply_masks": True,
    },
}
# TODO(synk): rot_sym > 0 path (random torch.rot90 by a python-level random
#             angle) is not implemented; config sets rotation_sym = 0.
# TODO(synk): ensemble_size == 1 branch (plain model(images) without the
#             weighted average) is not exercised by this config.


# --------------------------------------------------------------- mask glue --
def create_keep_mask(resolution, D, t, dO):
    """Combined keep-mask (1.0 keep, 0.0 zeroed) of the 4 PyTorch masks."""
    x = jnp.linspace(-1.0, 1.0, resolution)
    X, Y = jnp.meshgrid(x, x, indexing="ij")
    d = dO * D
    R = jnp.sqrt(X ** 2 + Y ** 2)
    mask_D = R > D
    mask_d = R < d
    mask_X = jnp.abs(X) < t / 2
    mask_Y = jnp.abs(Y) < t / 2
    zero = mask_D | mask_d | mask_X | mask_Y
    return (~zero).astype(jnp.float32)


# ------------------------------------------------------------ fused kernel --
def _fused_kernel(img_ref, n1_ref, n2_ref, mask_ref, w_ref, b_ref,
                  proc_ref, ens_ref, *,
                  E, C, HW, NPRED, GB, rn, amp, fw, scale_c,
                  discretize, apply_masks, uniform, cast_bf16):
    """One grid step = GB ensemble groups, one row per sample (C*HW lanes)."""
    img = img_ref[...]                                        # (GB*E, C*HW) f32

    # ---- apply_noise -------------------------------------------------------
    # Per-(sample, channel) mean is over HW only: take static, vreg-aligned
    # 256-lane chunks of each row (channel c of sample b).
    b_chunks = []
    for c in range(C):                                        # static unroll (C small)
        chunk = img[:, c * HW:(c + 1) * HW]                   # (rows, HW)
        mean_c = jnp.mean(chunk, axis=-1, keepdims=True)      # (rows, 1)
        b_chunks.append(chunk / mean_c)                       # exact divide (feeds round)
    Bimg = jnp.concatenate(b_chunks, axis=-1)                 # (rows, C*HW)

    if apply_masks:
        Bimg = Bimg * mask_ref[...]                           # (1, C*HW) broadcast

    aB = amp * Bimg                                           # hoisted, reused twice
    A = rn + rn * n1_ref[...] + aB + jnp.sqrt(aB) * n2_ref[...]
    if discretize == "on":
        Cv = jnp.round(A * scale_c)                           # scale_c = 2**bit / fw
        Cv = jnp.where(A > fw, jnp.float32(fw), Cv)           # reference quirk: clamps to fw
        Cv = jnp.where(A < 0.0, jnp.float32(0.0), Cv)
    else:
        Cv = A
    proc_ref[...] = Cv                                        # written once, never re-read

    # ---- linear head: single MXU dot fed from registers --------------------
    # w_ref is lane-dense (NOUT, C*HW); contract the last dims of both.
    x = Cv.astype(jnp.bfloat16) if cast_bf16 else Cv          # lossless when discretized
    mo = lax.dot_general(
        x, w_ref[...],
        dimension_numbers=(((1,), (1,)), ((), ())),
        preferred_element_type=jnp.float32) + b_ref[...]      # (rows, NOUT) f32

    # ---- ensemble weighted average over each group of E consecutive rows ---
    preds = mo[:, :NPRED]                                     # (rows, NPRED)
    w = mo[:, NPRED:NPRED + 1]                                # (rows, 1)
    if uniform:
        w = jnp.ones_like(w)
    wp = preds * w

    out_rows = []
    for g in range(GB):                                       # static unroll (GB small)
        base = g * E
        num = wp[base:base + 1, :]
        den = w[base:base + 1, :]
        for e in range(1, E):                                 # unrolled VPU adds
            num = num + wp[base + e:base + e + 1, :]
            den = den + w[base + e:base + e + 1, :]
        out_rows.append(num / den)                            # exact divide
    ens = out_rows[0] if GB == 1 else jnp.concatenate(out_rows, axis=0)
    ens_ref[0, :, :] = ens                                    # (GB, NPRED)


# ------------------------------------------------------------------ forward --
def ensemble_forward(images, tags, noise1, noise2, keep_mask, Wm, bm, conf):
    """Equivalent of EnsembleModel.forward for ensemble_size > 1."""
    E = int(conf["preproc"]["ensemble"])
    uniform = bool(conf["preproc"]["ensemble_unif"])
    Bn, Cn, H, W = images.shape
    HW = H * W
    CHW = Cn * HW
    G = Bn // E
    NOUT = Wm.shape[1]
    NPRED = NOUT - 1

    assert Bn % E == 0
    assert Bn % 8 == 0 and CHW % 128 == 0, "slab must respect the (8,128) rule"

    discretize = conf["noise"]["discretize"]
    rn = float(conf["noise"]["rn"])
    amp = rn * 10.0 ** (float(conf["noise"]["snr"]) / 20.0)
    fw = float(conf["noise"]["fw"])
    bit = int(conf["noise"]["bit"])
    cast_bf16 = (discretize == "on")                           # lossless only then

    # Lane-dense flat layouts (pure metadata reshapes): row b = flatten(C,H,W)
    # of sample b, identical to nn.Flatten order.
    images_f = images.reshape(Bn, CHW)
    noise1_f = noise1.reshape(Bn, CHW)
    noise2_f = noise2.reshape(Bn, CHW)
    mask_f = jnp.tile(keep_mask.reshape(1, HW), (1, Cn))       # (1, C*HW)

    # W lane-dense as (NOUT, C*HW): tiny resident block + one contiguous DMA.
    Wt = Wm.T
    if cast_bf16:
        Wt = Wt.astype(jnp.bfloat16)                           # halves W DMA/VMEM
    bm2 = bm.reshape(1, NOUT).astype(jnp.float32)

    # Grid: one step for the whole batch (single TC on v5e/v6e => a multi-step
    # grid is pure serial overhead).  Split into 2 steps only on v7x (2 TCs)
    # and only when each step keeps >= 8 sample rows ((8,128) sublane rule).
    samples_per_step = Bn
    try:
        kind = jax.devices()[0].device_kind.lower()
    except Exception:
        kind = ""
    if ("v7" in kind or "7x" in kind) and G % 2 == 0 and (Bn // 2) % 8 == 0:
        samples_per_step = Bn // 2
    num_steps = Bn // samples_per_step
    GB = samples_per_step // E                                 # groups per step

    kern = functools.partial(
        _fused_kernel,
        E=E, C=Cn, HW=HW, NPRED=NPRED, GB=GB,
        rn=rn, amp=amp, fw=fw, scale_c=(2.0 ** bit) / fw,
        discretize=discretize,
        apply_masks=bool(conf["noise"]["apply_masks"]),
        uniform=uniform, cast_bf16=cast_bf16,
    )

    slab_spec = pl.BlockSpec((samples_per_step, CHW), lambda s: (s, 0))

    def resident(shape):
        return pl.BlockSpec(shape, lambda s: (0, 0))           # same block every step

    proc_f, ens3 = pl.pallas_call(
        kern,
        grid=(num_steps,),
        in_specs=[slab_spec, slab_spec, slab_spec,
                  resident((1, CHW)),
                  resident((NOUT, CHW)),
                  resident((1, NOUT))],
        out_specs=(slab_spec,
                   pl.BlockSpec((1, GB, NPRED), lambda s: (s, 0, 0))),
        out_shape=(jax.ShapeDtypeStruct((Bn, CHW), jnp.float32),
                   jax.ShapeDtypeStruct((num_steps, GB, NPRED), jnp.float32)),
        compiler_params=pltpu.CompilerParams(
            dimension_semantics=("parallel",)),                # 2 TCs when split (v7x)
    )(images_f, noise1_f, noise2_f, mask_f, Wt, bm2)

    processed = proc_f.reshape(Bn, Cn, H, W)
    ensemble_output = ens3.reshape(G, NPRED)
    tags_out = tags[::E]                                       # glue: tag subsample
    return ensemble_output, tags_out, processed


# --------------------------------------------------------------------- main --
if __name__ == "__main__":
    conf = CONF
    E = conf["preproc"]["ensemble"]            # 4
    G = 2                                      # number of ensembles in batch
    B = G * E                                  # 8 stacked samples
    C = 4
    H = W = conf["preproc"]["resize"]          # 16
    NPRED = 7
    NOUT = NPRED + 1                           # last column = ensemble weight

    key = jax.random.PRNGKey(0)
    k_img, k_n1, k_n2, k_w, k_b, k_tag = jax.random.split(key, 6)

    images = jax.random.uniform(k_img, (B, C, H, W), jnp.float32, 0.1, 1.0)
    tags = jax.random.normal(k_tag, (B, NPRED), jnp.float32)
    # torch.randn draws of apply_noise, generated deterministically host-side
    noise1 = jax.random.normal(k_n1, (B, C, H, W), jnp.float32)
    noise2 = jax.random.normal(k_n2, (B, C, H, W), jnp.float32)

    # deterministic synthetic parameters for the wrapped `model` (flatten->Linear)
    Wm = jax.random.normal(k_w, (C * H * W, NOUT), jnp.float32) * 0.01
    bm = jax.random.normal(k_b, (1, NOUT), jnp.float32) * 0.01 + 0.5

    keep_mask = create_keep_mask(H, conf["noise"]["D"], conf["noise"]["t"],
                                 conf["noise"]["dO"])

    fwd = jax.jit(functools.partial(ensemble_forward, conf=conf))
    ens_out, tags_out, processed = fwd(images, tags, noise1, noise2,
                                       keep_mask, Wm, bm)

    jax.block_until_ready((ens_out, tags_out, processed))
    assert ens_out.shape == (G, NPRED)
    assert tags_out.shape == (G, NPRED)
    assert processed.shape == (B, C, H, W)
    print("KERNEL_OK")
</pallas_src>

<mosaic_0001>
module attributes {stable_mosaic.version = 11 : i64} {
  func.func @_fused_kernel(%arg0: i32, %arg1: memref<8x1024xf32, #tpu.memory_space<vmem>>, %arg2: memref<8x1024xf32, #tpu.memory_space<vmem>>, %arg3: memref<8x1024xf32, #tpu.memory_space<vmem>>, %arg4: memref<1x1024xf32, #tpu.memory_space<vmem>>, %arg5: memref<8x1024xbf16, #tpu.memory_space<vmem>>, %arg6: memref<1x8xf32, #tpu.memory_space<vmem>>, %arg7: memref<8x1024xf32, #tpu.memory_space<vmem>>, %arg8: memref<1x2x7xf32, #tpu.memory_space<vmem>>) attributes {dimension_semantics = [#tpu.dimension_semantics<parallel>], iteration_bounds = array<i64: 1>, scalar_prefetch = 0 : i64, scratch_operands = 0 : i64, tpu.core_type = #tpu.core_type<tc>, window_params = [{transform_indices = @transform_0, window_bounds = array<i64: 8, 1024>}, {transform_indices = @transform_1, window_bounds = array<i64: 8, 1024>}, {transform_indices = @transform_2, window_bounds = array<i64: 8, 1024>}, {pipeline_mode = #tpu.pipeline_mode<synchronous>, transform_indices = @transform_3, window_bounds = array<i64: 1, 1024>}, {pipeline_mode = #tpu.pipeline_mode<synchronous>, transform_indices = @transform_4, window_bounds = array<i64: 8, 1024>}, {pipeline_mode = #tpu.pipeline_mode<synchronous>, transform_indices = @transform_5, window_bounds = array<i64: 1, 8>}, {transform_indices = @transform_6, window_bounds = array<i64: 8, 1024>}, {transform_indices = @transform_7, window_bounds = array<i64: 1, 2, 7>}]} {
    %c0 = arith.constant 0 : index
    %c0_0 = arith.constant 0 : index
    %0 = vector.load %arg1[%c0, %c0_0] : memref<8x1024xf32, #tpu.memory_space<vmem>>, vector<8x1024xf32>
    %1 = vector.extract_strided_slice %0 {offsets = [0, 0], sizes = [8, 256], strides = [1, 1]} : vector<8x1024xf32> to vector<8x256xf32>
    %cst = arith.constant dense<0.000000e+00> : vector<8xf32>
    %2 = vector.multi_reduction <add>, %1, %cst [1] : vector<8x256xf32> to vector<8xf32>
    %3 = vector.shape_cast %2 : vector<8xf32> to vector<8x1xf32>
    %cst_1 = arith.constant 2.560000e+02 : f32
    %4 = vector.broadcast %cst_1 : f32 to vector<8x1xf32>
    %5 = arith.divf %3, %4 : vector<8x1xf32>
    %6 = vector.broadcast %5 : vector<8x1xf32> to vector<8x256xf32>
    %7 = arith.divf %1, %6 : vector<8x256xf32>
    %8 = vector.extract_strided_slice %0 {offsets = [0, 256], sizes = [8, 256], strides = [1, 1]} : vector<8x1024xf32> to vector<8x256xf32>
    %cst_2 = arith.constant dense<0.000000e+00> : vector<8xf32>
    %9 = vector.multi_reduction <add>, %8, %cst_2 [1] : vector<8x256xf32> to vector<8xf32>
    %10 = vector.shape_cast %9 : vector<8xf32> to vector<8x1xf32>
    %cst_3 = arith.constant 2.560000e+02 : f32
    %11 = vector.broadcast %cst_3 : f32 to vector<8x1xf32>
    %12 = arith.divf %10, %11 : vector<8x1xf32>
    %13 = vector.broadcast %12 : vector<8x1xf32> to vector<8x256xf32>
    %14 = arith.divf %8, %13 : vector<8x256xf32>
    %15 = vector.extract_strided_slice %0 {offsets = [0, 512], sizes = [8, 256], strides = [1, 1]} : vector<8x1024xf32> to vector<8x256xf32>
    %cst_4 = arith.constant dense<0.000000e+00> : vector<8xf32>
    %16 = vector.multi_reduction <add>, %15, %cst_4 [1] : vector<8x256xf32> to vector<8xf32>
    %17 = vector.shape_cast %16 : vector<8xf32> to vector<8x1xf32>
    %cst_5 = arith.constant 2.560000e+02 : f32
    %18 = vector.broadcast %cst_5 : f32 to vector<8x1xf32>
    %19 = arith.divf %17, %18 : vector<8x1xf32>
    %20 = vector.broadcast %19 : vector<8x1xf32> to vector<8x256xf32>
    %21 = arith.divf %15, %20 : vector<8x256xf32>
    %22 = vector.extract_strided_slice %0 {offsets = [0, 768], sizes = [8, 256], strides = [1, 1]} : vector<8x1024xf32> to vector<8x256xf32>
    %cst_6 = arith.constant dense<0.000000e+00> : vector<8xf32>
    %23 = vector.multi_reduction <add>, %22, %cst_6 [1] : vector<8x256xf32> to vector<8xf32>
    %24 = vector.shape_cast %23 : vector<8xf32> to vector<8x1xf32>
    %cst_7 = arith.constant 2.560000e+02 : f32
    %25 = vector.broadcast %cst_7 : f32 to vector<8x1xf32>
    %26 = arith.divf %24, %25 : vector<8x1xf32>
    %27 = vector.broadcast %26 : vector<8x1xf32> to vector<8x256xf32>
    %28 = arith.divf %22, %27 : vector<8x256xf32>
    %29 = tpu.concatenate %7, %14, %21, %28 in 1 : vector<8x256xf32>, vector<8x256xf32>, vector<8x256xf32>, vector<8x256xf32> -> vector<8x1024xf32>
    %c0_8 = arith.constant 0 : index
    %c0_9 = arith.constant 0 : index
    %30 = vector.load %arg4[%c0_8, %c0_9] : memref<1x1024xf32, #tpu.memory_space<vmem>>, vector<1x1024xf32>
    %31 = vector.broadcast %30 : vector<1x1024xf32> to vector<8x1024xf32>
    %32 = arith.mulf %29, %31 : vector<8x1024xf32>
    %cst_10 = arith.constant 1.000000e+01 : f32
    %33 = vector.broadcast %cst_10 : f32 to vector<8x1024xf32>
    %34 = arith.mulf %33, %32 : vector<8x1024xf32>
    %c0_11 = arith.constant 0 : index
    %c0_12 = arith.constant 0 : index
    %35 = vector.load %arg2[%c0_11, %c0_12] : memref<8x1024xf32, #tpu.memory_space<vmem>>, vector<8x1024xf32>
    %cst_13 = arith.constant 1.000000e+00 : f32
    %36 = vector.broadcast %cst_13 : f32 to vector<8x1024xf32>
    %37 = arith.mulf %36, %35 : vector<8x1024xf32>
    %cst_14 = arith.constant 1.000000e+00 : f32
    %38 = vector.broadcast %cst_14 : f32 to vector<8x1024xf32>
    %39 = arith.addf %38, %37 : vector<8x1024xf32>
    %40 = arith.addf %39, %34 : vector<8x1024xf32>
    %41 = math.sqrt %34 : vector<8x1024xf32>
    %c0_15 = arith.constant 0 : index
    %c0_16 = arith.constant 0 : index
    %42 = vector.load %arg3[%c0_15, %c0_16] : memref<8x1024xf32, #tpu.memory_space<vmem>>, vector<8x1024xf32>
    %43 = arith.mulf %41, %42 : vector<8x1024xf32>
    %44 = arith.addf %40, %43 : vector<8x1024xf32>
    %cst_17 = arith.constant 1.600000e+01 : f32
    %45 = vector.broadcast %cst_17 : f32 to vector<8x1024xf32>
    %46 = arith.mulf %44, %45 : vector<8x1024xf32>
    %47 = math.roundeven %46 : vector<8x1024xf32>
    %cst_18 = arith.constant 1.600000e+01 : f32
    %48 = vector.broadcast %cst_18 : f32 to vector<8x1024xf32>
    %49 = arith.cmpf ogt, %44, %48 : vector<8x1024xf32>
    %cst_19 = arith.constant 1.600000e+01 : f32
    %50 = vector.broadcast %cst_19 : f32 to vector<8x1024xf32>
    %51 = arith.select %49, %50, %47 : vector<8x1024xi1>, vector<8x1024xf32>
    %cst_20 = arith.constant 0.000000e+00 : f32
    %52 = vector.broadcast %cst_20 : f32 to vector<8x1024xf32>
    %53 = arith.cmpf olt, %44, %52 : vector<8x1024xf32>
    %cst_21 = arith.constant 0.000000e+00 : f32
    %54 = vector.broadcast %cst_21 : f32 to vector<8x1024xf32>
    %55 = arith.select %53, %54, %51 : vector<8x1024xi1>, vector<8x1024xf32>
    %c0_22 = arith.constant 0 : index
    %c0_23 = arith.constant 0 : index
    %56 = vector.load %arg7[%c0_22, %c0_23] : memref<8x1024xf32, #tpu.memory_space<vmem>>, vector<8x1024xf32>
    tpu.vector_store %arg7[%c0_22, %c0_23], %55 {strides = array<i32>} : memref<8x1024xf32, #tpu.memory_space<vmem>>, vector<8x1024xf32>,
    %57 = arith.truncf %55 : vector<8x1024xf32> to vector<8x1024xbf16>
    %c0_24 = arith.constant 0 : index
    %c0_25 = arith.constant 0 : index
    %58 = vector.load %arg5[%c0_24, %c0_25] : memref<8x1024xbf16, #tpu.memory_space<vmem>>, vector<8x1024xbf16>
    %cst_26 = arith.constant dense<0.000000e+00> : vector<8x8xf32>
    %59 = tpu.matmul %57, %58, %cst_26 {dimension_numbers = #tpu.dot_dimension_numbers<[1], [1], [0], [0], [0, 0, 1, 0], [], []>} : vector<8x1024xbf16>, vector<8x1024xbf16>, vector<8x8xf32> -> vector<8x8xf32>
    %c0_27 = arith.constant 0 : index
    %c0_28 = arith.constant 0 : index
    %60 = vector.load %arg6[%c0_27, %c0_28] : memref<1x8xf32, #tpu.memory_space<vmem>>, vector<1x8xf32>
    %61 = vector.broadcast %60 : vector<1x8xf32> to vector<8x8xf32>
    %62 = arith.addf %59, %61 : vector<8x8xf32>
    %63 = vector.extract_strided_slice %62 {offsets = [0, 0], sizes = [8, 7], strides = [1, 1]} : vector<8x8xf32> to vector<8x7xf32>
    %64 = vector.extract_strided_slice %62 {offsets = [0, 7], sizes = [8, 1], strides = [1, 1]} : vector<8x8xf32> to vector<8x1xf32>
    %65 = vector.broadcast %64 : vector<8x1xf32> to vector<8x7xf32>
    %66 = arith.mulf %63, %65 : vector<8x7xf32>
    %67 = vector.extract_strided_slice %66 {offsets = [0, 0], sizes = [1, 7], strides = [1, 1]} : vector<8x7xf32> to vector<1x7xf32>
    %68 = vector.extract_strided_slice %64 {offsets = [0, 0], sizes = [1, 1], strides = [1, 1]} : vector<8x1xf32> to vector<1x1xf32>
    %69 = vector.extract_strided_slice %66 {offsets = [1, 0], sizes = [1, 7], strides = [1, 1]} : vector<8x7xf32> to vector<1x7xf32>
    %70 = arith.addf %67, %69 : vector<1x7xf32>
    %71 = vector.extract_strided_slice %64 {offsets = [1, 0], sizes = [1, 1], strides = [1, 1]} : vector<8x1xf32> to vector<1x1xf32>
    %72 = arith.addf %68, %71 : vector<1x1xf32>
    %73 = vector.extract_strided_slice %66 {offsets = [2, 0], sizes = [1, 7], strides = [1, 1]} : vector<8x7xf32> to vector<1x7xf32>
    %74 = arith.addf %70, %73 : vector<1x7xf32>
    %75 = vector.extract_strided_slice %64 {offsets = [2, 0], sizes = [1, 1], strides = [1, 1]} : vector<8x1xf32> to vector<1x1xf32>
    %76 = arith.addf %72, %75 : vector<1x1xf32>
    %77 = vector.extract_strided_slice %66 {offsets = [3, 0], sizes = [1, 7], strides = [1, 1]} : vector<8x7xf32> to vector<1x7xf32>
    %78 = arith.addf %74, %77 : vector<1x7xf32>
    %79 = vector.extract_strided_slice %64 {offsets = [3, 0], sizes = [1, 1], strides = [1, 1]} : vector<8x1xf32> to vector<1x1xf32>
    %80 = arith.addf %76, %79 : vector<1x1xf32>
    %81 = vector.broadcast %80 : vector<1x1xf32> to vector<1x7xf32>
    %82 = arith.divf %78, %81 : vector<1x7xf32>
    %83 = vector.extract_strided_slice %66 {offsets = [4, 0], sizes = [1, 7], strides = [1, 1]} : vector<8x7xf32> to vector<1x7xf32>
    %84 = vector.extract_strided_slice %64 {offsets = [4, 0], sizes = [1, 1], strides = [1, 1]} : vector<8x1xf32> to vector<1x1xf32>
    %85 = vector.extract_strided_slice %66 {offsets = [5, 0], sizes = [1, 7], strides = [1, 1]} : vector<8x7xf32> to vector<1x7xf32>
    %86 = arith.addf %83, %85 : vector<1x7xf32>
    %87 = vector.extract_strided_slice %64 {offsets = [5, 0], sizes = [1, 1], strides = [1, 1]} : vector<8x1xf32> to vector<1x1xf32>
    %88 = arith.addf %84, %87 : vector<1x1xf32>
    %89 = vector.extract_strided_slice %66 {offsets = [6, 0], sizes = [1, 7], strides = [1, 1]} : vector<8x7xf32> to vector<1x7xf32>
    %90 = arith.addf %86, %89 : vector<1x7xf32>
    %91 = vector.extract_strided_slice %64 {offsets = [6, 0], sizes = [1, 1], strides = [1, 1]} : vector<8x1xf32> to vector<1x1xf32>
    %92 = arith.addf %88, %91 : vector<1x1xf32>
    %93 = vector.extract_strided_slice %66 {offsets = [7, 0], sizes = [1, 7], strides = [1, 1]} : vector<8x7xf32> to vector<1x7xf32>
    %94 = arith.addf %90, %93 : vector<1x7xf32>
    %95 = vector.extract_strided_slice %64 {offsets = [7, 0], sizes = [1, 1], strides = [1, 1]} : vector<8x1xf32> to vector<1x1xf32>
    %96 = arith.addf %92, %95 : vector<1x1xf32>
    %97 = vector.broadcast %96 : vector<1x1xf32> to vector<1x7xf32>
    %98 = arith.divf %94, %97 : vector<1x7xf32>
    %99 = tpu.concatenate %82, %98 in 0 : vector<1x7xf32>, vector<1x7xf32> -> vector<2x7xf32>
    %c0_29 = arith.constant 0 : index
    %c0_30 = arith.constant 0 : index
    %c0_31 = arith.constant 0 : index
    %100 = vector.load %arg8[%c0_29, %c0_30, %c0_31] : memref<1x2x7xf32, #tpu.memory_space<vmem>>, vector<1x2x7xf32>
    %101 = vector.shape_cast %100 : vector<1x2x7xf32> to vector<2x7xf32>
    %102 = vector.shape_cast %99 : vector<2x7xf32> to vector<1x2x7xf32>
    tpu.vector_store %arg8[%c0_29, %c0_30, %c0_31], %102 {strides = array<i32>} : memref<1x2x7xf32, #tpu.memory_space<vmem>>, vector<1x2x7xf32>,
    return
  }
  func.func @transform_0(%arg0: i32) -> (i32, i32) {
    %c0_i32 = arith.constant 0 : i32
    %c0_i32_0 = arith.constant 0 : i32
    return %arg0, %c0_i32 : i32, i32
  }
  func.func @transform_1(%arg0: i32) -> (i32, i32) {
    %c0_i32 = arith.constant 0 : i32
    %c0_i32_0 = arith.constant 0 : i32
    return %arg0, %c0_i32 : i32, i32
  }
  func.func @transform_2(%arg0: i32) -> (i32, i32) {
    %c0_i32 = arith.constant 0 : i32
    %c0_i32_0 = arith.constant 0 : i32
    return %arg0, %c0_i32 : i32, i32
  }
  func.func @transform_3(%arg0: i32) -> (i32, i32) {
    %c0_i32 = arith.constant 0 : i32
    %c0_i32_0 = arith.constant 0 : i32
    %c0_i32_1 = arith.constant 0 : i32
    return %c0_i32, %c0_i32_0 : i32, i32
  }
  func.func @transform_4(%arg0: i32) -> (i32, i32) {
    %c0_i32 = arith.constant 0 : i32
    %c0_i32_0 = arith.constant 0 : i32
    %c0_i32_1 = arith.constant 0 : i32
    return %c0_i32, %c0_i32_0 : i32, i32
  }
  func.func @transform_5(%arg0: i32) -> (i32, i32) {
    %c0_i32 = arith.constant 0 : i32
    %c0_i32_0 = arith.constant 0 : i32
    %c0_i32_1 = arith.constant 0 : i32
    return %c0_i32, %c0_i32_0 : i32, i32
  }
  func.func @transform_6(%arg0: i32) -> (i32, i32) {
    %c0_i32 = arith.constant 0 : i32
    %c0_i32_0 = arith.constant 0 : i32
    return %arg0, %c0_i32 : i32, i32
  }
  func.func @transform_7(%arg0: i32) -> (i32, i32, i32) {
    %c0_i32 = arith.constant 0 : i32
    %c0_i32_0 = arith.constant 0 : i32
    %c0_i32_1 = arith.constant 0 : i32
    return %arg0, %c0_i32, %c0_i32_0 : i32, i32, i32
  }
}

</mosaic_0001>

<bundles_post_ra>
// kernel: ensemble_forward.1
= control target key start
LH: loop header
LB: loop body
LE: loop exit
PB: predicated region body
PF: predicated region fallthrough
CT: control target
= control target key end

     0   :  { %s1137_s0 = inlined_call_operand.vmem [shape: f32[8,1024], index: 0, kind: input, shape index: {}]   ;;  %s1138_s1 = inlined_call_operand.vmem [shape: f32[8,1024], index: 1, kind: input, shape index: {}]   ;;  %s1139_s2 = inlined_call_operand.vmem [shape: f32[8,1024], index: 2, kind: input, shape index: {}]   ;;  %s1140_s3 = inlined_call_operand.vmem [shape: f32[1,1024], index: 3, kind: input, shape index: {}]   ;;  %s1141_s4 = inlined_call_operand.vmem [shape: bf16[8,1024], index: 4, kind: input, shape index: {}]   ;;  %s1142_s5 = inlined_call_operand.vmem [shape: f32[1,8], index: 5, kind: input, shape index: {}]   ;;  %s1143_s6 = inlined_call_operand.vmem [shape: f32[8,1024], index: 6, kind: output, shape index: {0}]   ;;  %s1144_s7 = inlined_call_operand.hbm [shape: f32[1,2,7], index: 7, kind: output, shape index: {1}]  }
   0x1   :  { %v764_v0 = vld [vmem:[%s1137_s0 + $0x20] sm:$0xff]  ;;  %v32_v1 = vld [vmem:[%s1137_s0 + $0x28] sm:$0xff]  ;;  %v779_v5 = vld [vmem:[%s1137_s0 + $0x30] sm:$0xff] }
   0x2   :  { %v27_v2 = vld [vmem:[%s1137_s0] sm:$0xff]  ;;  %v50_v3 = vadd.f32 %v32_v1, %v764_v0  ;;  %v28_v4 = vld [vmem:[%s1137_s0 + $0x8] sm:$0xff]  ;;  %v784_v6 = vld [vmem:[%s1137_s0 + $0x38] sm:$0xff] }
   0x3   :  { %v35_v7 = vadd.f32 %v28_v4, %v27_v2  ;;  %v789_v8 = vld [vmem:[%s1137_s0 + $0x10] sm:$0xff]  ;;  %v794_v9 = vld [vmem:[%s1137_s0 + $0x18] sm:$0xff]  ;;  %v57_v10 = vadd.f32 %v784_v6, %v779_v5 }
   0x4   :  { %51 = vadd.xlane.f32.xlu1 %v50_v3 }
   0x5   :  { %13 = vsyncpa [#allocation3], 0  ;;  %36 = vadd.xlane.f32.xlu0 %v35_v7  ;;  %v43_v11 = vadd.f32 %v794_v9, %v789_v8  ;;  %v290_v12 = vld [vmem:[%s1141_s4] sm:$0xff]  ;;  %v291_v13 = vld [vmem:[%s1141_s4 + $0x8] sm:$0xff]  ;;  %v66_v26 = vlaneseq }
   0x6   :  { %v548_v14 = vcombine.high %v290_v12, %v290_v12  ;;  %v547_v15 = vcombine.low %v290_v12, %v290_v12  ;;  %v550_v16 = vcombine.high %v291_v13, %v291_v13  ;;  %v549_v17 = vcombine.low %v291_v13, %v291_v13  ;;  %v809_v18 = vld [vmem:[%s1141_s4 + $0x10] sm:$0xff]  ;;  %v816_v20 = vld [vmem:[%s1141_s4 + $0x18] sm:$0xff]  ;;  %v64_v33 = vld [vmem:[%s1140_s3] sm:$0xff] }
   0x7   :  { %v552_v19 = vcombine.high %v809_v18, %v809_v18  ;;  %v554_v21 = vcombine.high %v816_v20, %v816_v20  ;;  %v67_v31 = vshrl.u32 %v66_v26, 7  ;;  %v124_v13 = vld [vmem:[%s1138_s1 + $0x10] sm:$0xff] }
   0x8   :  { %58 = vadd.xlane.f32.xlu1 %v57_v10  ;;  %343 = vmatprep.subr.bf16.mxu0 %v548_v14  ;;  %v129_v14 = vld [vmem:[%s1138_s1 + $0x38] sm:$0xff] }
   0x9   :  { %44 = vadd.xlane.f32.xlu0 %v43_v11  ;;  %383 = vmatprep.subr.bf16.mxu1 %v550_v16  ;;  %v88_v32 = vsub.s32 5, %v67_v31  ;;  %v68_v34 = vsub.s32 0, %v67_v31  ;;  %v72_v35 = vsub.s32 1, %v67_v31  ;;  %v76_v40 = vsub.s32 2, %v67_v31  ;;  %v123_v11 = vld [vmem:[%s1138_s1 + $0x8] sm:$0xff] }
   0xa   :  { %344 = vmatpush1.bf16.xpose.msra.mxu0 %v547_v15  ;;  %384 = vmatpush1.bf16.xpose.msra.mxu1 %v549_v17  ;;  %v80_v41 = vsub.s32 3, %v67_v31  ;;  %v96_v53 = vsub.s32 7, %v67_v31  ;;  %v84_v58 = vsub.s32 4, %v67_v31  ;;  %v92_v60 = vsub.s32 6, %v67_v31 }
   0xb   :  { %423 = vmatprep.subr.bf16.mxu0 %v552_v19  ;;  %463 = vmatprep.subr.bf16.mxu1 %v554_v21  ;;  %v89_v36 = vrot.slane %v64_v33, %v88_v32  ;;  %v69_v38 = vrot.slane %v64_v33, %v68_v34  ;;  %v73_v39 = vrot.slane %v64_v33, %v72_v35  ;;  %v131_v16 = vadd.f32 1.0, %v123_v11  ;;  %v126_v19 = vld [vmem:[%s1138_s1 + $0x20] sm:$0xff]  ;;  %v128_v21 = vld [vmem:[%s1138_s1 + $0x30] sm:$0xff] }
   0xc   :  { %v77_v49 = vrot.slane %v64_v33, %v76_v40  ;;  %v81_v50 = vrot.slane %v64_v33, %v80_v41  ;;  %v97_v63 = vrot.slane %v64_v33, %v96_v53  ;;  %v85_v3 = vrot.slane %v64_v33, %v84_v58  ;;  %v207_v41 = vld [vmem:[%s1139_s2 + $0x28] sm:$0xff] }
   0xd   :  { %v137_v26 = vadd.f32 1.0, %v129_v14 }
  0x8d   :  { %v52_v22 = vpop.xlane.xlu1 %51 }
  0x8e   :  { %v53_v23 = vmul.f32 0.00390625, %v52_v22  ;;  %v37_v24 = vpop.xlane.xlu0 %36 }
  0x8f   :  { %v39_v25 = vmul.f32 0.00390625, %v37_v24 }
  0x90   :  { %671 = vrcp.f32 %v53_v23 }
  0x91   :  { %673 = vrcp.f32 %v39_v25  ;;  %v59_v27 = vpop.xlane.xlu1 %58  ;;  %v132_v25 = vadd.f32 1.0, %v124_v13 }
  0x92   :  { %v60_v28 = vmul.f32 0.00390625, %v59_v27  ;;  %v45_v29 = vpop.xlane.xlu0 %44 }
  0x93   :  { %v46_v30 = vmul.f32 0.00390625, %v45_v29  ;;  %v134_v29 = vadd.f32 1.0, %v126_v19 }
  0x95   :  { %675 = vrcp.f32 %v46_v30  ;;  %v873_v30 = vadd.f32 1.0, %v128_v21 }
  0x96   :  { %677 = vrcp.f32 %v60_v28  ;;  %v551_v28 = vcombine.low %v809_v18, %v809_v18 }
  0x9d   :  { %v672_v37 = vpop.eup %671 }
  0x9e   :  { %v674_v42 = vpop.eup %673  ;;  %v56_v43 = vmul.f32 %v672_v37, %v32_v1 }
  0x9f   :  { %v41_v44 = vmul.f32 %v674_v42, %v27_v2  ;;  %v42_v45 = vmul.f32 %v674_v42, %v28_v4  ;;  %v55_v4 = vmul.f32 %v672_v37, %v764_v0  ;;  %v122_v0 = vld [vmem:[%s1138_s1] sm:$0xff]  ;;  %v203_v42 = vld [vmem:[%s1139_s2 + $0x8] sm:$0xff] }
  0xa0   :  { %v111_v46 = vmul.f32 %v89_v36, %v56_v43  ;;  %v130_v23 = vadd.f32 1.0, %v122_v0 }
  0xa1   :  { %v106_v47 = vmul.f32 %v69_v38, %v41_v44  ;;  %v107_v48 = vmul.f32 %v73_v39, %v42_v45  ;;  %v110_v12 = vmul.f32 %v85_v3, %v55_v4 }
  0xa2   :  { %v676_v51 = vpop.eup %675  ;;  %v823_v52 = vmul.f32 10.0, %v111_v46 }
  0xa3   :  { %v678_v54 = vpop.eup %677  ;;  %v825_v55 = vmul.f32 10.0, %v107_v48  ;;  %v48_v56 = vmul.f32 %v676_v51, %v789_v8  ;;  %v49_v57 = vmul.f32 %v676_v51, %v794_v9  ;;  %v829_v59 = vmul.f32 10.0, %v106_v47 }
  0xa4   :  { %679 = vrsqrt.f32 %v823_v52  ;;  %v63_v1 = vmul.f32 %v678_v54, %v784_v6  ;;  %v93_v8 = vrot.slane %v64_v33, %v92_v60  ;;  %v62_v9 = vmul.f32 %v678_v54, %v779_v5  ;;  %v127_v6 = vld [vmem:[%s1138_s1 + $0x28] sm:$0xff]  ;;  %v125_v5 = vld [vmem:[%s1138_s1 + $0x18] sm:$0xff]  ;;  %v202_v54 = vld [vmem:[%s1139_s2] sm:$0xff] }
  0xa5   :  { %v108_v61 = vmul.f32 %v77_v49, %v48_v56  ;;  %v109_v62 = vmul.f32 %v81_v50, %v49_v57  ;;  %681 = vrsqrt.f32 %v825_v55  ;;  %v135_v17 = vadd.f32 1.0, %v127_v6 }
  0xa6   :  { %683 = vrsqrt.f32 %v829_v59  ;;  %v113_v10 = vmul.f32 %v97_v63, %v63_v1  ;;  %v112_v15 = vmul.f32 %v93_v8, %v62_v9  ;;  %v133_v24 = vadd.f32 1.0, %v125_v5 }
  0xa7   :  { %v834_v2 = vmul.f32 10.0, %v109_v62  ;;  %v837_v7 = vmul.f32 10.0, %v108_v61  ;;  %v869_v27 = vmul.f32 10.0, %v110_v12  ;;  %v139_v33 = vadd.f32 %v131_v16, %v825_v55  ;;  %v205_v12 = vld [vmem:[%s1139_s2 + $0x18] sm:$0xff] }
  0xa8   :  { %v867_v22 = vmul.f32 10.0, %v113_v10  ;;  %v875_v32 = vmul.f32 10.0, %v112_v15  ;;  %vm155_vm0 = vcmp.eq.f32.partialorder %v825_v55, inf  ;;  %v143_v34 = vadd.f32 %v135_v17, %v823_v52 }
  0xa9   :  { %685 = vrsqrt.f32 %v834_v2  ;;  %vm157_vm1 = vcmp.eq.f32.partialorder %v825_v55, 0.0  ;;  %v158_v36 = vand.u32 2147483648, %v825_v55  ;;  %v138_v39 = vadd.f32 %v130_v23, %v829_v59 }
  0xaa   :  { %687 = vrsqrt.f32 %v837_v7  ;;  %vm183_vm2 = vcmp.eq.f32.partialorder %v823_v52, inf  ;;  %v186_v40 = vand.u32 2147483648, %v823_v52  ;;  %vm148_vm3 = vcmp.eq.f32.partialorder %v829_v59, inf }
  0xab   :  { %689 = vrsqrt.f32 %v867_v22  ;;  %vm150_vm4 = vcmp.eq.f32.partialorder %v829_v59, 0.0  ;;  %vm185_vm5 = vcmp.eq.f32.partialorder %v823_v52, 0.0  ;;  %v151_v46 = vand.u32 2147483648, %v829_v59 }
  0xac   :  { %v141_v48 = vadd.f32 %v133_v24, %v834_v2  ;;  %vm169_vm6 = vcmp.eq.f32.partialorder %v834_v2, inf  ;;  %vm171_vm7 = vcmp.eq.f32.partialorder %v834_v2, 0.0  ;;  %v172_v56 = vand.u32 2147483648, %v834_v2 }
  0xad   :  { %v140_v57 = vadd.f32 %v132_v25, %v837_v7  ;;  %vm162_vm8 = vcmp.eq.f32.partialorder %v837_v7, inf  ;;  %vm164_vm9 = vcmp.eq.f32.partialorder %v837_v7, 0.0  ;;  %v165_v1 = vand.u32 2147483648, %v837_v7 }
  0xae   :  { %v928_v8 = vadd.f32 %v137_v26, %v867_v22  ;;  %v200_v9 = vand.u32 2147483648, %v867_v22  ;;  %691 = vrsqrt.f32 %v869_v27  ;;  %vm197_vm11 = vcmp.eq.f32.partialorder %v867_v22, inf }
  0xaf   :  { %693 = vrsqrt.f32 %v875_v32  ;;  %v179_v15 = vand.u32 2147483648, %v869_v27  ;;  %vm199_vm15 = vcmp.eq.f32.partialorder %v867_v22, 0.0 }
  0xb1   :  { %v680_v31 = vpop.eup %679 }
  0xb2   :  { %v682_v35 = vpop.eup %681  ;;  %v182_v37 = vmul.f32 %v680_v31, %v823_v52 }
  0xb3   :  { %v154_v38 = vmul.f32 %v682_v35, %v825_v55  ;;  %v684_v44 = vpop.eup %683 }
  0xb4   :  { %v184_v43 = vsel %vm183_vm2, %v823_v52, %v182_v37  ;;  %v147_v50 = vmul.f32 %v684_v44, %v829_v59 }
  0xb5   :  { %v156_v45 = vsel %vm155_vm0, %v825_v55, %v154_v38  ;;  %v187_v47 = vsel %vm185_vm5, %v186_v40, %v184_v43  ;;  %vm178_vm5 = vcmp.eq.f32.partialorder %v869_v27, 0.0 }
  0xb6   :  { %v159_v49 = vsel %vm157_vm1, %v158_v36, %v156_v45  ;;  %v215_v51 = vmul.f32 %v207_v41, %v187_v47  ;;  %v686_v53 = vpop.eup %685  ;;  %v149_v55 = vsel %vm148_vm3, %v829_v59, %v147_v50  ;;  %v936_v59 = vadd.f32 %v134_v29, %v869_v27 }
  0xb7   :  { %v211_v52 = vmul.f32 %v203_v42, %v159_v49  ;;  %v168_v60 = vmul.f32 %v686_v53, %v834_v2  ;;  %v688_v61 = vpop.eup %687  ;;  %v152_v63 = vsel %vm150_vm4, %v151_v46, %v149_v55  ;;  %vm176_vm3 = vcmp.eq.f32.partialorder %v869_v27, inf }
  0xb8   :  { %v916_v58 = vadd.f32 %v215_v51, %v143_v34  ;;  %v210_v3 = vmul.f32 %v202_v54, %v152_v63  ;;  %v161_v5 = vmul.f32 %v688_v61, %v837_v7  ;;  %v690_v19 = vpop.eup %689 }
  0xb9   :  { %v920_v62 = vadd.f32 %v211_v52, %v139_v33  ;;  %v170_v11 = vsel %vm169_vm6, %v834_v2, %v168_v60  ;;  %v204_v2 = vld [vmem:[%s1139_s2 + $0x10] sm:$0xff]  ;;  %v196_v41 = vmul.f32 %v690_v19, %v867_v22  ;;  %vm190_vm6 = vcmp.eq.f32.partialorder %v875_v32, inf }
  0xba   :  { %v231_v4 = vmul.f32 16.0, %v916_v58  ;;  %v939_v6 = vadd.f32 %v210_v3, %v138_v39  ;;  %vm247_vm10 = vcmp.gt.f32.partialorder %v916_v58, 16.0  ;;  %v173_v14 = vsel %vm171_vm7, %v172_v56, %v170_v11 }
  0xbb   :  { %v227_v10 = vmul.f32 16.0, %v920_v62  ;;  %vm243_vm12 = vcmp.gt.f32.partialorder %v920_v62, 16.0  ;;  %vm259_vm13 = vcmp.lt.f32.partialorder %v920_v62, 0.0  ;;  %vm263_vm14 = vcmp.lt.f32.partialorder %v916_v58, 0.0  ;;  %v692_v61 = vpop.eup %691 }
  0xbc   :  { %v637_v0 = vcvt.f32.s32 %v231_v4  ;;  %v226_v16 = vmul.f32 16.0, %v939_v6  ;;  %v635_v17 = vand.u32 2147483647, %v231_v4  ;;  %v640_v24 = vand.u32 2147483648, %v231_v4  ;;  %vm976_vm2 = vmneg %vm259_vm13 }
  0xbd   :  { %v605_v13 = vcvt.f32.s32 %v227_v10  ;;  %v213_v25 = vmul.f32 %v205_v12, %v173_v14  ;;  %v603_v26 = vand.u32 2147483647, %v227_v10  ;;  %v608_v29 = vand.u32 2147483648, %v227_v10  ;;  %vm557_vm7 = vmpackc.low %vm976_vm2, %vm976_vm2 }
  0xbe   :  { %v638_v23 = vcvt.s32.f32 %v637_v0  ;;  %v597_v31 = vcvt.f32.s32 %v226_v16  ;;  %v163_v33 = vsel %vm162_vm8, %v837_v7, %v161_v5  ;;  %vm966_vm0 = vcmp.lt.f32.partialorder %v635_v17, 8388608.0 }
  0xbf   :  { %v606_v21 = vcvt.s32.f32 %v605_v13  ;;  %v962_v36 = vadd.f32 %v213_v25, %v141_v48  ;;  %v166_v37 = vsel %vm164_vm9, %v165_v1, %v163_v33  ;;  %v595_v43 = vand.u32 2147483647, %v226_v16 }
  0xc0   :  { %v639_v35 = vand.u32 2147483647, %v638_v23  ;;  %v598_v38 = vcvt.s32.f32 %v597_v31  ;;  %v212_v40 = vmul.f32 %v204_v2, %v166_v37  ;;  %vm604_vm1 = vcmp.lt.f32.partialorder %v603_v26, 8388608.0  ;;  %v206_v26 = vld [vmem:[%s1139_s2 + $0x20] sm:$0xff] }
  0xc1   :  { %v607_v34 = vand.u32 2147483647, %v606_v21  ;;  %v972_v45 = vmul.f32 16.0, %v962_v36  ;;  %v600_v47 = vand.u32 2147483648, %v226_v16  ;;  %vm258_vm4 = vcmp.lt.f32.partialorder %v939_v6, 0.0 }
  0xc2   :  { %v641_v44 = vor.u32 %v640_v24, %v639_v35  ;;  %v599_v46 = vand.u32 2147483647, %v598_v38  ;;  %v980_v48 = vadd.f32 %v212_v40, %v140_v57  ;;  %v198_v56 = vsel %vm197_vm11, %v867_v22, %v196_v41  ;;  %vm1024_vm11 = vmneg %vm263_vm14  ;;  %v208_v41 = vld [vmem:[%s1139_s2 + $0x30] sm:$0xff] }
  0xc3   :  { %v609_v42 = vor.u32 %v608_v29, %v607_v34  ;;  %v621_v51 = vcvt.f32.s32 %v972_v45  ;;  %vm596_vm8 = vcmp.lt.f32.partialorder %v595_v43, 8388608.0  ;;  %vm242_vm9 = vcmp.gt.f32.partialorder %v939_v6, 16.0 }
  0xc4   :  { %v642_v50 = vsel %vm966_vm0, %v641_v44, %v231_v4  ;;  %v601_v52 = vor.u32 %v600_v47, %v599_v46  ;;  %v1017_v3 = vmul.f32 16.0, %v980_v48  ;;  %v209_v4 = vld [vmem:[%s1139_s2 + $0x38] sm:$0xff]  ;;  %v619_v12 = vand.u32 2147483647, %v972_v45 }
  0xc5   :  { %v610_v49 = vsel %vm604_vm1, %v609_v42, %v227_v10  ;;  %v255_v54 = vsel %vm247_vm10, 16.0, %v642_v50  ;;  %vm1009_vm10 = vmneg %vm258_vm4  ;;  %v622_v1 = vcvt.s32.f32 %v621_v51  ;;  %v694_v10 = vpop.eup %693  ;;  %v201_v5 = vsel %vm199_vm15, %v200_v9, %v198_v56 }
  0xc6   :  { %v251_v53 = vsel %vm243_vm12, 16.0, %v610_v49  ;;  %v271_v60 = vsel %vm263_vm14, 0.0, %v255_v54  ;;  %v602_v63 = vsel %vm596_vm8, %v601_v52, %v226_v16  ;;  %vm261_vm12 = vcmp.lt.f32.partialorder %v962_v36, 0.0  ;;  %vm577_vm14 = vmpackc.low %vm1024_vm11, %vm1024_vm11 }
  0xc7   :  { %v267_v57 = vsel %vm259_vm13, 0.0, %v251_v53  ;;  %v558_v55 = vpack.c.bf16 %v251_v53, %v251_v53  ;;  %279 = vst [vmem:[%s1143_s6 + $0x28] sm:$0xff] %v271_v60  ;;  %v250_v11 = vsel %vm242_vm9, 16.0, %v602_v63  ;;  %v623_v16 = vand.u32 2147483647, %v622_v1  ;;  %vm562_vm13 = vmpackc.low %vm1009_vm10, %vm1009_vm10 }
  0xc8   :  { %275 = vst [vmem:[%s1143_s6 + $0x8] sm:$0xff] %v267_v57  ;;  %v266_v13 = vsel %vm258_vm4, 0.0, %v250_v11  ;;  %v563_v14 = vpack.c.bf16 %v250_v11, %v250_v11  ;;  %v624_v58 = vand.u32 2147483648, %v972_v45  ;;  %v578_v17 = vpack.c.bf16 %v255_v54, %v255_v54  ;;  %vm1064_vm1 = vmneg %vm261_vm12 }
  0xc9   :  { %559 = vmatprep.mubr.msk.bf16.mxu0 %vm557_vm7, %v558_v55  ;;  %274 = vst [vmem:[%s1143_s6] sm:$0xff] %v266_v13  ;;  %v613_v19 = vcvt.f32.s32 %v1017_v3  ;;  %v217_v22 = vmul.f32 %v209_v4, %v201_v5  ;;  %v175_v9 = vmul.f32 %v692_v61, %v869_v27  ;;  %vm245_vm15 = vcmp.gt.f32.partialorder %v962_v36, 16.0 }
  0xca   :  { %564 = vmatmul.mubr.msk.bf16.vlgmr.msra.gmra.mxu0 %vm562_vm13, %v563_v14  ;;  %v625_v6 = vor.u32 %v624_v58, %v623_v16  ;;  %v189_v21 = vmul.f32 %v694_v10, %v875_v32  ;;  %v193_v23 = vand.u32 2147483648, %v875_v32  ;;  %vm620_vm0 = vcmp.lt.f32.partialorder %v619_v12, 8388608.0 }
  0xcb   :  { %424 = vmatpush1.bf16.xpose.msra.mxu0 %v551_v28  ;;  %579 = vmatprep.mubr.msk.bf16.mxu0 %vm577_vm14, %v578_v17  ;;  %v614_v24 = vcvt.s32.f32 %v613_v19  ;;  %v225_v25 = vadd.f32 %v217_v22, %v928_v8  ;;  %v177_v2 = vsel %vm176_vm3, %v869_v27, %v175_v9  ;;  %v611_v28 = vand.u32 2147483647, %v1017_v3  ;;  %vm567_vm3 = vmpackc.low %vm1064_vm1, %vm1064_vm1 }
  0xcc   :  { %v626_v29 = vsel %vm620_vm0, %v625_v6, %v972_v45  ;;  %v616_v8 = vand.u32 2147483648, %v1017_v3  ;;  %v180_v31 = vsel %vm178_vm5, %v179_v15, %v177_v2  ;;  %v191_v37 = vsel %vm190_vm6, %v875_v32, %v189_v21 }
  0xcd   :  { %v253_v33 = vsel %vm245_vm15, 16.0, %v626_v29  ;;  %v615_v34 = vand.u32 2147483647, %v614_v24  ;;  %v233_v35 = vmul.f32 16.0, %v225_v25  ;;  %vm260_vm2 = vcmp.lt.f32.partialorder %v980_v48, 0.0 }
  0xce   :  { %v269_v38 = vsel %vm261_vm12, 0.0, %v253_v33  ;;  %v568_v39 = vpack.c.bf16 %v253_v33, %v253_v33  ;;  %v214_v40 = vmul.f32 %v206_v26, %v180_v31  ;;  %v553_v27 = vcombine.low %v816_v20, %v816_v20  ;;  %vm1099_vm7 = vmneg %vm260_vm2 }
  0xcf   :  { %277 = vst [vmem:[%s1143_s6 + $0x18] sm:$0xff] %v269_v38  ;;  %v617_v15 = vor.u32 %v616_v8, %v615_v34  ;;  %v653_v36 = vcvt.f32.s32 %v233_v35  ;;  %vm192_vm4 = vcmp.eq.f32.partialorder %v875_v32, 0.0  ;;  %vm612_vm5 = vcmp.lt.f32.partialorder %v611_v28, 8388608.0  ;;  %vm572_vm8 = vmpackc.low %vm1099_vm7, %vm1099_vm7  ;;  %v546_v28 = vld [vmem:[%s1142_s5] ss:$0 sm:$0xff]  ;;  %s720_s5 = smov [#allocation2]  }
  0xd0   :  { %569 = vmatprep.mubr.msk.bf16.mxu1 %vm567_vm3, %v568_v39  ;;  %v222_v42 = vadd.f32 %v214_v40, %v936_v59  ;;  %v144_v43 = vadd.f32 %v873_v30, %v875_v32  ;;  %v194_v44 = vsel %vm192_vm4, %v193_v23, %v191_v37  ;;  %vm244_vm6 = vcmp.gt.f32.partialorder %v980_v48, 16.0 }
  0xd1   :  { %v618_v45 = vsel %vm612_vm5, %v617_v15, %v1017_v3  ;;  %v654_v7 = vcvt.s32.f32 %v653_v36  ;;  %v216_v46 = vmul.f32 %v208_v41, %v194_v44  ;;  %v651_v49 = vand.u32 2147483647, %v233_v35 }
  0xd2   :  { %v252_v47 = vsel %vm244_vm6, 16.0, %v618_v45  ;;  %v656_v50 = vand.u32 2147483648, %v233_v35  ;;  %v230_v59 = vmul.f32 16.0, %v222_v42  ;;  %vm265_vm9 = vcmp.lt.f32.partialorder %v225_v25, 0.0 }
  0xd3   :  { %v268_v30 = vsel %vm260_vm2, 0.0, %v252_v47  ;;  %v573_v32 = vpack.c.bf16 %v252_v47, %v252_v47  ;;  %v655_v51 = vand.u32 2147483647, %v654_v7  ;;  %v224_v53 = vadd.f32 %v216_v46, %v144_v43  ;;  %vm585_vm12 = vmneg %vm265_vm9 }
  0xd4   :  { %276 = vst [vmem:[%s1143_s6 + $0x10] sm:$0xff] %v268_v30  ;;  %v629_v52 = vcvt.f32.s32 %v230_v59  ;;  %vm652_vm10 = vcmp.lt.f32.partialorder %v651_v49, 8388608.0  ;;  %vm249_vm11 = vcmp.gt.f32.partialorder %v225_v25, 16.0  ;;  %v627_v55 = vand.u32 2147483647, %v230_v59  ;;  %vm587_vm14 = vmpackc.low %vm585_vm12, %vm585_vm12 }
  0xd5   :  { %574 = vmatmul.mubr.msk.bf16.vlgmr.msra.gmra.mxu1 %vm572_vm8, %v573_v32  ;;  %v657_v54 = vor.u32 %v656_v50, %v655_v51  ;;  %v232_v56 = vmul.f32 16.0, %v224_v53  ;;  %v632_v62 = vand.u32 2147483648, %v230_v59  ;;  %vm262_vm13 = vcmp.lt.f32.partialorder %v222_v42, 0.0 }
  0xd6   :  { %464 = vmatpush1.bf16.xpose.msra.mxu1 %v553_v27  ;;  %v630_v48 = vcvt.s32.f32 %v629_v52  ;;  %vm628_vm15 = vcmp.lt.f32.partialorder %v627_v55, 8388608.0  ;;  %vm1117_vm0 = vmneg %vm262_vm13  ;;  %vm246_vm1 = vcmp.gt.f32.partialorder %v222_v42, 16.0  ;;  %vm264_vm2 = vcmp.lt.f32.partialorder %v224_v53, 0.0 }
  0xd7   :  { %v658_v57 = vsel %vm652_vm10, %v657_v54, %v233_v35  ;;  %v645_v60 = vcvt.f32.s32 %v232_v56  ;;  %v643_v11 = vand.u32 2147483647, %v232_v56  ;;  %v648_v5 = vand.u32 2147483648, %v232_v56  ;;  %vm582_vm3 = vmpackc.low %vm1117_vm0, %vm1117_vm0 }
  0xd8   :  { %v257_v61 = vsel %vm249_vm11, 16.0, %v658_v57  ;;  %v631_v63 = vand.u32 2147483647, %v630_v48  ;;  %vm248_vm5 = vcmp.gt.f32.partialorder %v224_v53, 16.0  ;;  %vm590_vm6 = vmneg %vm264_vm2  ;;  %v719_v21 = vmov 7  }
  0xd9   :  { %v273_v1 = vsel %vm265_vm9, 0.0, %v257_v61  ;;  %v588_v3 = vpack.c.bf16 %v257_v61, %v257_v61  ;;  %v646_v4 = vcvt.s32.f32 %v645_v60  ;;  %vm644_vm4 = vcmp.lt.f32.partialorder %v643_v11, 8388608.0  ;;  %vm592_vm7 = vmpackc.low %vm590_vm6, %vm590_vm6  ;;  %662 = vset.pattern.permute.xlu1 %v719_v21  ;;  %661 = vset.pattern.permute.xlu0 %v719_v21 }
  0xda   :  { %281 = vst [vmem:[%s1143_s6 + $0x38] sm:$0xff] %v273_v1  ;;  %v633_v10 = vor.u32 %v632_v62, %v631_v63  ;;  %vm524_vm8 = vcmask 1040384   ;;  %vm526_vm9 = vcmask 50176  }
  0xdb   :  { %589 = vmatprep.mubr.msk.bf16.mxu1 %vm587_vm14, %v588_v3  ;;  %v647_v12 = vand.u32 2147483647, %v646_v4 }
  0xdc   :  { %v634_v13 = vsel %vm628_vm15, %v633_v10, %v230_v59 }
  0xdd   :  { %v254_v14 = vsel %vm246_vm1, 16.0, %v634_v13  ;;  %v649_v16 = vor.u32 %v648_v5, %v647_v12 }
  0xde   :  { %v270_v58 = vsel %vm262_vm13, 0.0, %v254_v14  ;;  %v583_v17 = vpack.c.bf16 %v254_v14, %v254_v14 }
  0xdf   :  { %278 = vst [vmem:[%s1143_s6 + $0x20] sm:$0xff] %v270_v58  ;;  %v650_v19 = vsel %vm644_vm4, %v649_v16, %v232_v56 }
  0xe0   :  { %584 = vmatmul.mubr.msk.bf16.vlgmr.msra.gmra.mxu0 %vm582_vm3, %v583_v17  ;;  %v256_v22 = vsel %vm248_vm5, 16.0, %v650_v19 }
  0xe1   :  { %v272_v9 = vsel %vm264_vm2, 0.0, %v256_v22  ;;  %v593_v6 = vpack.c.bf16 %v256_v22, %v256_v22 }
  0xe2   :  { %280 = vst [vmem:[%s1143_s6 + $0x30] sm:$0xff] %v272_v9  ;;  %s536_s6 = sshll.u32 %s720_s5, 4  ;;  %s537_s6 = int_to_ptr.vmem [resolvable:$true] %s536_s6 }
  0xe3   :  { %594 = vmatmul.mubr.msk.bf16.vlgmr.msra.gmra.mxu1 %vm592_vm7, %v593_v6  ;;  %s697_s21 = scalar_lea.vmem %s537_s6, 32  ;;  %p702_p1 = scmp.lt.s32.totalorder %s537_s6, %s537_s6 }
  0xe4   :  { %p698_p0 = scmp.ne.s32.totalorder %s537_s6, %s697_s21  ;;  %p703_p2 = scmp.lt.s32.totalorder %s697_s21, %s697_s21 }
  0xe6   :  { %p704_p3 = por %p703_p2, %p702_p1 }
  0xe8   :  { %p705_p4 = pnand %p704_p3, %p698_p0 }
 0x18a   :  { %v363_v23 = vpop.f32.mrf.mxu0 }
 0x18b   :  { %v364_v31 = vadd.f32 %v546_v28, %v363_v23 }
 0x18c   :  { %v365_v24 = vpop.f32.mrf.mxu0 }
 0x18e   :  { %v366_v25 = vpop.f32.mrf.mxu0 }
 0x190   :  { %v367_v2 = vpop.f32.mrf.mxu0 }
 0x195   :  { %v403_v26 = vpop.f32.mrf.mxu1 }
 0x196   :  { %v404_v33 = vadd.f32 %v403_v26, %v364_v31 }
 0x197   :  { %v405_v29 = vpop.f32.mrf.mxu1 }
 0x199   :  { %v406_v18 = vpop.f32.mrf.mxu1 }
 0x19b   :  { %v407_v8 = vpop.f32.mrf.mxu1 }
 0x1a0   :  { %v443_v34 = vpop.f32.mrf.mxu0 }
 0x1a1   :  { %v444_v35 = vadd.f32 %v443_v34, %v404_v33 }
 0x1a2   :  { %v445_v37 = vpop.f32.mrf.mxu0 }
 0x1a3   :  { %v483_v38 = vpop.f32.mrf.mxu1 }
 0x1a4   :  { %v446_v39 = vpop.f32.mrf.mxu0  ;;  %v484_v40 = vadd.f32 %v483_v38, %v444_v35 }
 0x1a5   :  { %v485_v41 = vpop.f32.mrf.mxu1 }
 0x1a6   :  { %v447_v27 = vpop.f32.mrf.mxu0  ;;  %491 = vperm.xlu1 %662, %v484_v40   ;;  %v499_v15 = vrot.slane %v484_v40, 1  ;;  %v505_v43 = vrot.slane %v484_v40, 2  ;;  %v511_v20 = vrot.slane %v484_v40, 3 }
 0x1a7   :  { %v486_v36 = vpop.f32.mrf.mxu1 }
 0x1a8   :  { %v501_v42 = vadd.f32 %v499_v15, %v484_v40 }
 0x1a9   :  { %v487_v44 = vpop.f32.mrf.mxu1 }
 0x1aa   :  { %v507_v45 = vadd.f32 %v505_v43, %v501_v42 }
 0x1ac   :  { %v513_v7 = vadd.f32 %v511_v20, %v507_v45 }
 0x1ae   :  { %516 = vperm.xlu0 %661, %v513_v7  }
 0x221   :  { %v492_v46 = vpop.permute.xlu1 %491 }
 0x222   :  { %v494_v47 = vmul.f32 %v492_v46, %v484_v40 }
 0x224   :  { %v496_v50 = vrot.slane %v494_v47, 1  ;;  %v502_v30 = vrot.slane %v494_v47, 2  ;;  %v508_v51 = vrot.slane %v494_v47, 3 }
 0x226   :  { %v498_v59 = vadd.f32 %v496_v50, %v494_v47 }
 0x228   :  { %v504_v32 = vadd.f32 %v502_v30, %v498_v59 }
 0x229   :  { %v517_v49 = vpop.permute.xlu0 %516 }
 0x22a   :  { %695 = vrcp.f32 %v517_v49  ;;  %v510_v53 = vadd.f32 %v508_v51, %v504_v32 }
 0x237   :  { %v696_v52 = vpop.eup %695 }
 0x238   :  { %v520_v54 = vmul.f32 %v696_v52, %v510_v53 }
 0x23a   :  { %v522_v56 = vrot.slane %v520_v54, 3 }
 0x23c   :  { %v525_v48 = vsel %vm524_vm8, %v520_v54, %v522_v56 }
 0x23d   :  { %527 = vst.msk [vmem:[#allocation2] sm:$0x3] %vm526_vm9, %v525_v48 }
 0x23e   :  { %708 = shalt.err (!%p705_p4)
}
 0x23f   :  { %539 = dma.vmem_to_hbm [thread:$0]  %s537_s6, 32, %s1144_s7, [#allocation3]  }
 0x240   :  { %717 = dma.done.wait [#allocation3], 32  }
 0x241   :  { %718 = vsyncadd [#allocation3], 4294967264 }
 0x242   :  { %545 = vsyncpa [#allocation3], 1 }

</bundles_post_ra>
